<compile_context>
chip_gen: v7x
topology: tpu7x:2x2x1
jax: 0.10.0
libtpu: 0.0.40
codegen_flags: <defaults>
</compile_context>

<pallas_src>
import jax
import jax.numpy as jnp
from jax import lax
from jax.experimental import pallas as pl
from jax.experimental.pallas import tpu as pltpu


def _self_attention_kernel(maxlen_ref, x_ref, w_ref, lens_ref, rep_ref, scores_ref):
    x = x_ref[...]                                # [TB, T, H], native dtype (no f32 copy)
    w = w_ref[...]                                # [1, H] f32
    lens = lens_ref[...]                          # [TB, 1] int32
    max_len = maxlen_ref[0]                       # scalar int32 (SMEM, GLOBAL max)

    TB, T, H = x.shape

    # scores = tanh(inp @ w): per-op upcast multiply (native*f32 -> f32) + lane
    # reduce over H.  (An MXU matvec here would need a (TB*T,1) -> (TB,T) lane
    # relayout that costs more than the reduce it saves; this phase hides under
    # the inp HBM DMA anyway.)
    raw = jnp.sum((x * w[None, :, :]).astype(jnp.float32), axis=-1)    # [TB, T]
    s = jnp.tanh(raw)

    # Softmax numerator.  tanh bounds |s| <= 1, so exp() needs no max-shift for
    # stability, and its denominator cancels against the post-mask
    # renormalization below, so both softmax reduces are skipped.
    e = jnp.exp(s)                                                     # [TB, T]

    # Length mask -- identical to PyTorch get_mask(): rows with
    # lengths[i] == max(lengths) stay fully unmasked.
    t_idx = lax.broadcasted_iota(jnp.int32, (TB, T), 1)                # [TB, T]
    keep = jnp.logical_or(lens >= max_len, t_idx < lens)               # [TB, T]
    masked = e * keep.astype(jnp.float32)

    # Fused (softmax + mask) renormalization via EUP reciprocal + 1 Newton step.
    denom = jnp.sum(masked, axis=-1, keepdims=True)                    # [TB, 1]
    inv = pl.reciprocal(denom, approx=True)
    inv = inv * (2.0 - denom * inv)                                    # ~f32 accuracy
    scores = masked * inv                                              # [TB, T] f32

    # weighted = inp * scores ; rep = weighted.sum(T)  ==  batched (1,T)@(T,H)
    # on the MXU (no [TB,T,H] broadcast temporary, no sublane reduce).  Both
    # operands go in the input dtype (single native-precision MXU pass) with an
    # f32 accumulator; scores sum to 1 so the cast costs ~no accuracy.
    rep = lax.dot_general(
        scores.astype(x.dtype)[:, None, :], x,                         # (TB,1,T)@(TB,T,H)
        dimension_numbers=(((2,), (1,)), ((0,), (0,))),
        preferred_element_type=jnp.float32,
    ).reshape(TB, H)

    rep_ref[...] = rep.astype(rep_ref.dtype)

    # Lane-dense scores store when the wrapper allocated a 128-multiple width.
    T_out = scores_ref.shape[-1]
    if T_out != T:
        scores = jnp.concatenate(
            [scores, jnp.zeros((TB, T_out - T), dtype=scores.dtype)], axis=-1)
    scores_ref[...] = scores.astype(scores_ref.dtype)


def _vmem_capacity_bytes():
    """Physical VMEM of the current generation (v5e/v6e: 128 MiB, v7x: 64 MiB)."""
    try:
        return int(pltpu.get_tpu_info().vmem_capacity_bytes)
    except Exception:
        return 64 * 1024 * 1024        # conservative (v7x-sized) fallback


def _per_row_vmem_bytes(T, T_out, H, in_itemsize, out_itemsize):
    """Conservative live-VMEM bytes per batch row of one tile (incl. temps)."""
    inp_dbuf = 2 * T * H * in_itemsize       # double-buffered inp block
    f32_tmp = 2 * T * H * 4                  # x*w upcast/product + MXU staging
    vec_tmp = 10 * T * 4 + 16                # [TB,T] f32 score-path temps + lens
    out_dbuf = 2 * (T_out + H) * out_itemsize + H * 4
    return inp_dbuf + f32_tmp + vec_tmp + out_dbuf


def _pick_tile_b(B, per_row, vmem_cap):
    if B <= 8:
        return B
    # Size the double-buffered working set to ~half the generation's VMEM
    # (v5e/v6e: up to ~64 MiB; v7x: up to ~32 MiB) -- bigger tiles = fewer
    # grid steps = higher HBM-roofline utilization.
    budget = min(vmem_cap // 2, 64 * 1024 * 1024)
    tb = max(8, int(budget // per_row) // 8 * 8)
    # Keep at least 2 grid steps so the DMA pipeline overlaps and both v7x
    # TensorCores get work, whenever the batch is big enough to split.
    if B >= 16:
        tb = min(tb, max(8, ((B + 1) // 2 + 7) // 8 * 8))
    if tb >= B:
        return B
    return tb


def self_attention(inp, attn_weights, lengths, *, tile_b=None):
    """inp: [B, T, H], attn_weights: [H], lengths: [B] int.

    Returns (representations [B, H], scores [B, T]) matching PyTorch
    SelfAttention.forward.
    """
    B, T, H = inp.shape
    out_dtype = inp.dtype
    in_itemsize = jnp.dtype(inp.dtype).itemsize
    out_itemsize = jnp.dtype(out_dtype).itemsize

    # Lane-pad the scores output only when T is large (>=128) and misaligned:
    # dense stores without inflating HBM write bytes for small T.
    T_out = (-(-T // 128) * 128) if (T >= 128 and T % 128 != 0) else T

    vmem_cap = _vmem_capacity_bytes()
    per_row = _per_row_vmem_bytes(T, T_out, H, in_itemsize, out_itemsize)

    if tile_b is None:
        tb = _pick_tile_b(B, per_row, vmem_cap)
    else:
        tb = max(1, min(int(tile_b), B))
        if tb != B:
            tb = max(8, (tb // 8) * 8)       # (8,*) sublane legality for 2-D outputs
            if tb >= B:
                tb = B

    # No wrapper-side padding: ragged last tile handled by Pallas OOB blocks
    # (OOB output rows are discarded; garbage in them never touches valid rows).
    grid = (pl.cdiv(B, tb),)

    # vmem_limit from the actual working set (+ headroom), capped per generation.
    ws = per_row * tb + 4 * (H + 64)
    vmem_limit = min(int(vmem_cap * 0.8), max(ws + ws // 2 + (8 << 20), 32 << 20))

    # Global max length via scalar prefetch (SMEM) -- mandatory under tiling.
    max_len = jnp.max(lengths).astype(jnp.int32).reshape(1)
    lens2d = lengths.astype(jnp.int32).reshape(B, 1)
    w2d = attn_weights.astype(jnp.float32).reshape(1, H)     # keep VPU math in f32

    cost = pl.CostEstimate(
        flops=4 * B * T * H,
        transcendentals=2 * B * T,
        bytes_accessed=B * T * H * in_itemsize
        + (B * T_out + B * H) * out_itemsize + B * 4 + H * 4,
    )

    grid_spec = pltpu.PrefetchScalarGridSpec(
        num_scalar_prefetch=1,                                  # max_len -> SMEM
        grid=grid,
        in_specs=[
            pl.BlockSpec((tb, T, H), lambda i, m: (i, 0, 0)),   # inp (streamed)
            pl.BlockSpec((1, H), lambda i, m: (0, 0)),          # attn weights
            pl.BlockSpec((tb, 1), lambda i, m: (i, 0)),         # lengths (tiny VMEM blk)
        ],
        out_specs=(
            pl.BlockSpec((tb, H), lambda i, m: (i, 0)),         # representations
            pl.BlockSpec((tb, T_out), lambda i, m: (i, 0)),     # scores
        ),
    )

    rep, scores = pl.pallas_call(
        _self_attention_kernel,
        out_shape=(
            jax.ShapeDtypeStruct((B, H), out_dtype),
            jax.ShapeDtypeStruct((B, T_out), out_dtype),
        ),
        grid_spec=grid_spec,
        compiler_params=pltpu.CompilerParams(
            dimension_semantics=("parallel",),
            vmem_limit_bytes=int(vmem_limit),
        ),
        cost_estimate=cost,
    )(max_len, inp, w2d, lens2d)

    if T_out != T:
        scores = scores[:, :T]
    return rep, scores


if __name__ == "__main__":
    def ref(inp, w, lens):
        s = jnp.tanh(inp @ w)
        s = jax.nn.softmax(s, axis=-1)
        max_len = jnp.max(lens)
        t_idx = jnp.arange(inp.shape[1])[None, :]
        keep = jnp.logical_or(lens[:, None] >= max_len, t_idx < lens[:, None])
        masked = s * keep.astype(inp.dtype)
        scores = masked / jnp.sum(masked, axis=-1, keepdims=True)
        rep = jnp.sum(inp * scores[:, :, None], axis=1)
        return rep, scores

    key = jax.random.PRNGKey(0)
    k_inp, k_w, k_inp2, k_len2 = jax.random.split(key, 4)

    # Case 1: shapes matching the module example (B=2, T=8, H=32), one block.
    B, T, H = 2, 8, 32
    inp = jax.random.normal(k_inp, (B, T, H), dtype=jnp.float32)
    # nn.init.uniform_(attn_weights, -0.005, 0.005), deterministic
    attn_weights = jax.random.uniform(k_w, (H,), dtype=jnp.float32,
                                      minval=-0.005, maxval=0.005)
    lengths = jnp.array([8, 5], dtype=jnp.int32)

    rep, scores = self_attention(inp, attn_weights, lengths)
    jax.block_until_ready((rep, scores))
    rep_r, scores_r = ref(inp, attn_weights, lengths)
    assert jnp.allclose(rep, rep_r, rtol=1e-4, atol=1e-4), "representation mismatch"
    assert jnp.allclose(scores, scores_r, rtol=1e-4, atol=1e-4), "scores mismatch"

    # Case 2: multi-step batch grid (exercises pipelined batch tiling, the
    # scalar-prefetched global max(lengths), and the no-pad grid path).
    B2, T2, H2 = 16, 8, 32
    inp2 = jax.random.normal(k_inp2, (B2, T2, H2), dtype=jnp.float32)
    lengths2 = jax.random.randint(k_len2, (B2,), 3, T2 + 1).astype(jnp.int32)
    rep2, scores2 = self_attention(inp2, attn_weights, lengths2, tile_b=8)
    jax.block_until_ready((rep2, scores2))
    rep2_r, scores2_r = ref(inp2, attn_weights, lengths2)
    assert jnp.allclose(rep2, rep2_r, rtol=1e-4, atol=1e-4), "tiled representation mismatch"
    assert jnp.allclose(scores2, scores2_r, rtol=1e-4, atol=1e-4), "tiled scores mismatch"

    print("KERNEL_OK")
</pallas_src>

<mosaic_0001>
module attributes {stable_mosaic.version = 11 : i64} {
  func.func @_self_attention_kernel(%arg0: i32, %arg1: memref<1xi32, #tpu.memory_space<smem>>, %arg2: memref<2x8x32xf32, #tpu.memory_space<vmem>>, %arg3: memref<1x32xf32, #tpu.memory_space<vmem>>, %arg4: memref<2x1xi32, #tpu.memory_space<vmem>>, %arg5: memref<2x32xf32, #tpu.memory_space<vmem>>, %arg6: memref<2x8xf32, #tpu.memory_space<vmem>>) attributes {dimension_semantics = [#tpu.dimension_semantics<parallel>], iteration_bounds = array<i64: 1>, scalar_prefetch = 1 : i64, scratch_operands = 0 : i64, tpu.core_type = #tpu.core_type<tc>, window_params = [{transform_indices = @transform_0, window_bounds = array<i64: 2, 8, 32>}, {pipeline_mode = #tpu.pipeline_mode<synchronous>, transform_indices = @transform_1, window_bounds = array<i64: 1, 32>}, {transform_indices = @transform_2, window_bounds = array<i64: 2, 1>}, {transform_indices = @transform_3, window_bounds = array<i64: 2, 32>}, {transform_indices = @transform_4, window_bounds = array<i64: 2, 8>}]} {
    %c0 = arith.constant 0 : index
    %c0_0 = arith.constant 0 : index
    %c0_1 = arith.constant 0 : index
    %0 = vector.load %arg2[%c0, %c0_0, %c0_1] : memref<2x8x32xf32, #tpu.memory_space<vmem>>, vector<2x8x32xf32>
    %c0_2 = arith.constant 0 : index
    %c0_3 = arith.constant 0 : index
    %1 = vector.load %arg3[%c0_2, %c0_3] : memref<1x32xf32, #tpu.memory_space<vmem>>, vector<1x32xf32>
    %c0_4 = arith.constant 0 : index
    %c0_5 = arith.constant 0 : index
    %2 = vector.load %arg4[%c0_4, %c0_5] : memref<2x1xi32, #tpu.memory_space<vmem>>, vector<2x1xi32>
    %c0_6 = arith.constant 0 : index
    %3 = memref.load %arg1[%c0_6] : memref<1xi32, #tpu.memory_space<smem>>
    %4 = vector.shape_cast %1 : vector<1x32xf32> to vector<1x1x32xf32>
    %5 = vector.broadcast %4 : vector<1x1x32xf32> to vector<2x8x32xf32>
    %6 = arith.mulf %0, %5 : vector<2x8x32xf32>
    %cst = arith.constant dense<0.000000e+00> : vector<2x8xf32>
    %7 = vector.multi_reduction <add>, %6, %cst [2] : vector<2x8x32xf32> to vector<2x8xf32>
    %8 = math.tanh %7 : vector<2x8xf32>
    %9 = math.exp %8 : vector<2x8xf32>
    %10 = tpu.iota {dimensions = array<i32: 1>} : vector<2x8xi32>
    %11 = vector.broadcast %3 : i32 to vector<2x1xi32>
    %12 = arith.cmpi sge, %2, %11 : vector<2x1xi32>
    %13 = vector.broadcast %2 : vector<2x1xi32> to vector<2x8xi32>
    %14 = arith.cmpi slt, %10, %13 : vector<2x8xi32>
    %15 = vector.broadcast %12 : vector<2x1xi1> to vector<2x8xi1>
    %16 = arith.ori %15, %14 : vector<2x8xi1>
    %17 = arith.extui %16 : vector<2x8xi1> to vector<2x8xi32>
    %18 = arith.sitofp %17 : vector<2x8xi32> to vector<2x8xf32>
    %19 = arith.mulf %9, %18 : vector<2x8xf32>
    %cst_7 = arith.constant dense<0.000000e+00> : vector<2xf32>
    %20 = vector.multi_reduction <add>, %19, %cst_7 [1] : vector<2x8xf32> to vector<2xf32>
    %21 = vector.shape_cast %20 : vector<2xf32> to vector<2x1xf32>
    %22 = tpu.reciprocal %21 {approx = true} : vector<2x1xf32> -> vector<2x1xf32>
    %23 = arith.mulf %21, %22 : vector<2x1xf32>
    %cst_8 = arith.constant 2.000000e+00 : f32
    %24 = vector.broadcast %cst_8 : f32 to vector<2x1xf32>
    %25 = arith.subf %24, %23 : vector<2x1xf32>
    %26 = arith.mulf %22, %25 : vector<2x1xf32>
    %27 = vector.broadcast %26 : vector<2x1xf32> to vector<2x8xf32>
    %28 = arith.mulf %19, %27 : vector<2x8xf32>
    %29 = vector.shape_cast %28 : vector<2x8xf32> to vector<2x1x8xf32>
    %cst_9 = arith.constant dense<0.000000e+00> : vector<2x1x32xf32>
    %30 = tpu.matmul %29, %0, %cst_9 {dimension_numbers = #tpu.dot_dimension_numbers<[2], [1], [1], [2], [0, 0, 0, 1, 1, 2], [0], [0]>} : vector<2x1x8xf32>, vector<2x8x32xf32>, vector<2x1x32xf32> -> vector<2x1x32xf32>
    %31 = vector.shape_cast %30 : vector<2x1x32xf32> to vector<2x32xf32>
    %c0_10 = arith.constant 0 : index
    %c0_11 = arith.constant 0 : index
    %32 = vector.load %arg5[%c0_10, %c0_11] : memref<2x32xf32, #tpu.memory_space<vmem>>, vector<2x32xf32>
    tpu.vector_store %arg5[%c0_10, %c0_11], %31 {strides = array<i32>} : memref<2x32xf32, #tpu.memory_space<vmem>>, vector<2x32xf32>,
    %c0_12 = arith.constant 0 : index
    %c0_13 = arith.constant 0 : index
    %33 = vector.load %arg6[%c0_12, %c0_13] : memref<2x8xf32, #tpu.memory_space<vmem>>, vector<2x8xf32>
    tpu.vector_store %arg6[%c0_12, %c0_13], %28 {strides = array<i32>} : memref<2x8xf32, #tpu.memory_space<vmem>>, vector<2x8xf32>,
    return
  }
  func.func @transform_0(%arg0: i32, %arg1: memref<1xi32, #tpu.memory_space<smem>>) -> (i32, i32, i32) {
    %c0_i32 = arith.constant 0 : i32
    %c0_i32_0 = arith.constant 0 : i32
    %c0_i32_1 = arith.constant 0 : i32
    return %arg0, %c0_i32, %c0_i32_0 : i32, i32, i32
  }
  func.func @transform_1(%arg0: i32, %arg1: memref<1xi32, #tpu.memory_space<smem>>) -> (i32, i32) {
    %c0_i32 = arith.constant 0 : i32
    %c0_i32_0 = arith.constant 0 : i32
    %c0_i32_1 = arith.constant 0 : i32
    return %c0_i32, %c0_i32_0 : i32, i32
  }
  func.func @transform_2(%arg0: i32, %arg1: memref<1xi32, #tpu.memory_space<smem>>) -> (i32, i32) {
    %c0_i32 = arith.constant 0 : i32
    %c0_i32_0 = arith.constant 0 : i32
    return %arg0, %c0_i32 : i32, i32
  }
  func.func @transform_3(%arg0: i32, %arg1: memref<1xi32, #tpu.memory_space<smem>>) -> (i32, i32) {
    %c0_i32 = arith.constant 0 : i32
    %c0_i32_0 = arith.constant 0 : i32
    return %arg0, %c0_i32 : i32, i32
  }
  func.func @transform_4(%arg0: i32, %arg1: memref<1xi32, #tpu.memory_space<smem>>) -> (i32, i32) {
    %c0_i32 = arith.constant 0 : i32
    %c0_i32_0 = arith.constant 0 : i32
    return %arg0, %c0_i32 : i32, i32
  }
}

</mosaic_0001>

<bundles_post_ra>
// kernel: tpu_custom_call.1
= control target key start
LH: loop header
LB: loop body
LE: loop exit
PB: predicated region body
PF: predicated region fallthrough
CT: control target
= control target key end

     0   :  { %12 = vsyncpa [#allocation5], 0  ;;  %s533_s0 = inlined_call_operand.<no memory space> [shape: s32[1], index: 0, kind: input, shape index: {}]   ;;  %s534_s1 = inlined_call_operand.hbm [shape: f32[2,8,32], index: 1, kind: input, shape index: {}]   ;;  %s535_s2 = inlined_call_operand.vmem [shape: f32[1,32], index: 2, kind: input, shape index: {}]   ;;  %s536_s3 = inlined_call_operand.vmem [shape: s32[2,1], index: 3, kind: input, shape index: {}]   ;;  %s537_s4 = inlined_call_operand.hbm [shape: f32[2,32], index: 4, kind: output, shape index: {0}]   ;;  %s538_s5 = inlined_call_operand.hbm [shape: f32[2,8], index: 5, kind: output, shape index: {1}]  }
   0x1   :  { %13 = vsyncpa [#allocation6], 0 }
   0x2   :  { %14 = vsyncpa [#allocation9], 0  ;;  %s445_s18 = smov [#allocation4]   ;;  %s373_s22 = scalar_lea.hbm %s534_s1, 256 }
   0x3   :  { %s20_s19 = sshll.u32 %s445_s18, 4  ;;  %p374_p0 = scmp.ne.s32.totalorder %s534_s1, %s373_s22  ;;  %s21_s19 = int_to_ptr.vmem [resolvable:$true] %s20_s19 }
   0x4   :  { %p377_p1 = scmp.lt.u32.totalorder %s373_s22, %s534_s1 }
   0x6   :  { %p379_p2 = pnand %p377_p1, %p374_p0 }
   0x8   :  { %382 = shalt.err (!%p379_p2)
}
   0x9   :  { %s383_s27 = scalar_lea.vmem %s21_s19, 256  ;;  %p388_p4 = scmp.lt.s32.totalorder %s21_s19, %s21_s19 }
   0xa   :  { %p384_p3 = scmp.ne.s32.totalorder %s21_s19, %s383_s27  ;;  %p389_p5 = scmp.lt.s32.totalorder %s383_s27, %s383_s27 }
   0xc   :  { %p390_p6 = por %p389_p5, %p388_p4 }
   0xe   :  { %p391_p7 = pnand %p390_p6, %p384_p3 }
  0x10   :  { %394 = shalt.err (!%p391_p7)
}
  0x11   :  { %s446_s28 = smov 128   ;;  %s447_s29 = smov 8  }
  0x12   :  { %26 = dma.hbm_to_vmem [thread:$0]  %s534_s1, 256, %s21_s19, [#allocation5], %s446_s28, %s446_s28, %s447_s29  }
  0x13   :  { %439 = dma.done.wait [#allocation5], 256  }
  0x14   :  { %440 = vsyncadd [#allocation5], 4294967040  ;;  %v448_v0 = vmov 0   ;;  %v62_v1 = vstv %s533_s0  ;;  %v37_v2 = vld [vmem:[%s536_s3] sm:$0x3]  ;;  %vm47_vm0 = vcmask 261120   ;;  %v60_v12 = vlaneseq }
  0x15   :  { %361 = vset.pattern.permute.xlu0 %v448_v0  ;;  %362 = vset.pattern.permute.xlu1 %v448_v0  ;;  %v34_v3 = vld [vmem:[#allocation4] sm:$0xff]  ;;  %vm63_vm1 = vcmp.ge.s32.totalorder %v37_v2, %v62_v1  ;;  %v35_v6 = vld [vmem:[#allocation4 + $0x8] sm:$0xff]  ;;  %v449_v11 = vmov 0.0   ;;  %vm111_vm5 = vcmask 1041409   ;;  %vm114_vm6 = vcmask 58368   ;;  %s451_s0 = smov [#allocation8]  }
  0x16   :  { %v335_v4 = vld [vmem:[%s535_s2] ss:$0 sm:$0xff]  ;;  %65 = vperm.xlu0 %361, %v37_v2   ;;  %v68_v7 = vsel %vm63_vm1, 1, %v448_v0  ;;  %348 = vmatprep.subr.mxu1 %v449_v11  ;;  %v78_v13 = vshrl.u32 %v60_v12, 7  ;;  %v61_v15 = vand.u32 127, %v60_v12  ;;  %vm450_vm7 = vmmov 0  }
  0x17   :  { %v45_v5 = vmul.f32 %v335_v4, %v34_v3  ;;  %v46_v8 = vmul.f32 %v335_v4, %v35_v6  ;;  %343 = vmatprep.subr.mxu0 %v449_v11  ;;  %349 = vmatpush3.msra.mxu1 %v35_v6  ;;  %vm143_vm8 = vcmask 64512   ;;  %s322_s1 = sshll.u32 %s451_s0, 4  ;;  %s323_s1 = int_to_ptr.vmem [resolvable:$true] %s322_s1 }
  0x18   :  { %344 = vmatpush3.msra.mxu0 %v34_v3  ;;  %v79_v17 = vsub.s32 0, %v78_v13  ;;  %v86_v18 = vsub.s32 1, %v78_v13  ;;  %v105_v35 = vsub.s32 %v61_v15, %v78_v13  ;;  %350 = vmatprep.mubr.msk.f32.mxu1 %vm450_vm7, %v449_v11  ;;  %s395_s2 = scalar_lea.vmem %s323_s1, 32  ;;  %p400_p9 = scmp.lt.s32.totalorder %s323_s1, %s323_s1 }
  0x19   :  { %v48_v9 = vsel %vm47_vm0, %v45_v5, 0.0  ;;  %v51_v10 = vsel %vm47_vm0, %v46_v8, 0.0  ;;  %345 = vmatprep.mubr.msk.f32.mxu0 %vm450_vm7, %v449_v11  ;;  %p396_p8 = scmp.ne.s32.totalorder %s323_s1, %s395_s2  ;;  %p401_p10 = scmp.lt.s32.totalorder %s395_s2, %s395_s2 }
  0x1a   :  { %49 = vadd.xlane.f32.xlu1 %v48_v9  ;;  %70 = vperm.xlu0 %361, %v68_v7  }
  0x1b   :  { %p402_p11 = por %p401_p10, %p400_p9 }
  0x1d   :  { %p403_p12 = pnand %p402_p11, %p396_p8 }
  0x1e   :  { %52 = vadd.xlane.f32.xlu1 %v51_v10 }
  0x95   :  { %v66_v14 = vpop.permute.xlu0 %65 }
  0x96   :  { %vm67_vm2 = vcmp.lt.s32.totalorder %v61_v15, %v66_v14 }
  0x99   :  { %v71_v16 = vpop.permute.xlu0 %70 }
  0x9a   :  { %vm72_vm3 = vcmp.eq.s32.totalorder %v71_v16, 1 }
  0x9b   :  { %vm73_vm4 = vmor %vm72_vm3, %vm67_vm2 }
  0x9c   :  { %v336_v19 = vsel %vm73_vm4, 1.0, %v449_v11 }
  0x9d   :  { %v80_v20 = vrot.slane %v336_v19, %v79_v17  ;;  %v87_v21 = vrot.slane %v336_v19, %v86_v18 }
  0x9f   :  { %82 = vbcast.lane.b32.xlu0 %v80_v20, 256  ;;  %89 = vbcast.lane.b32.xlu1 %v87_v21, 256 }
  0xa7   :  { %v50_v22 = vpop.xlane.xlu1 %49 }
  0xa8   :  { %363 = vtanh.f32 %v50_v22 }
  0xab   :  { %v53_v23 = vpop.xlane.xlu1 %52 }
  0xac   :  { %365 = vtanh.f32 %v53_v23 }
  0xb2   :  { %v364_v24 = vpop.eup %363 }
  0xb3   :  { %v56_v25 = vmul.f32 1.442695, %v364_v24 }
  0xb5   :  { %367 = vpow2.f32 %v56_v25 }
  0xb6   :  { %v366_v26 = vpop.eup %365 }
  0xb7   :  { %v58_v27 = vmul.f32 1.442695, %v366_v26 }
  0xb9   :  { %369 = vpow2.f32 %v58_v27 }
  0xbf   :  { %v368_v28 = vpop.eup %367 }
  0xc3   :  { %v370_v31 = vpop.eup %369 }
 0x111   :  { %v83_v29 = vpop.permute.xlu0 %82  ;;  %v90_v32 = vpop.permute.xlu1 %89 }
 0x112   :  { %v93_v30 = vmul.f32 %v368_v28, %v83_v29  ;;  %v94_v33 = vmul.f32 %v370_v31, %v90_v32 }
 0x114   :  { %98 = vperm.xlu0 %361, %v93_v30  }
 0x118   :  { %101 = vperm.xlu0 %361, %v94_v33  }
 0x193   :  { %v99_v34 = vpop.permute.xlu0 %98 }
 0x194   :  { %v106_v37 = vrot.slane %v99_v34, %v105_v35 }
 0x197   :  { %v102_v36 = vpop.permute.xlu0 %101 }
 0x198   :  { %v110_v38 = vrot.slane %v102_v36, %v105_v35 }
 0x19a   :  { %v112_v39 = vsel %vm111_vm5, %v110_v38, %v106_v37 }
 0x19b   :  { %v115_v40 = vsel %vm114_vm6, %v112_v39, 0.0 }
 0x19c   :  { %116 = vadd.xlane.f32.xlu0 %v115_v40 }
 0x229   :  { %v117_v41 = vpop.xlane.xlu0 %116 }
 0x22a   :  { %371 = vrcp.f32 %v117_v41 }
 0x234   :  { %v372_v42 = vpop.eup %371 }
 0x235   :  { %v119_v43 = vmul.f32 %v372_v42, %v117_v41 }
 0x237   :  { %v120_v44 = vsub.f32 2.0, %v119_v43 }
 0x239   :  { %v121_v45 = vmul.f32 %v372_v42, %v120_v44 }
 0x23b   :  { %v130_v46 = vrot.slane %v121_v45, %v86_v18  ;;  %v126_v47 = vrot.slane %v121_v45, %v79_v17 }
 0x23d   :  { %v134_v48 = vmul.f32 %v130_v46, %v94_v33  ;;  %v133_v49 = vmul.f32 %v126_v47, %v93_v30 }
 0x23f   :  { %218 = vperm.xlu1 %362, %v134_v48  }
 0x243   :  { %137 = vperm.xlu1 %362, %v133_v49  }
 0x2be   :  { %v219_v50 = vpop.permute.xlu1 %218 }
 0x2bf   :  { %v223_v51 = vrot.slane %v219_v50, %v105_v35 }
 0x2c1   :  { %351 = vmatmul.mubr.msk.f32.vlgmr.msra.gmra.mrb[0].mxu1 %vm143_vm8, %v223_v51 }
 0x2c2   :  { %v138_v52 = vpop.permute.xlu1 %137 }
 0x2c3   :  { %v142_v53 = vrot.slane %v138_v52, %v105_v35 }
 0x2c5   :  { %346 = vmatmul.mubr.msk.f32.vlgmr.msra.gmra.mrb[0].mxu0 %vm143_vm8, %v142_v53  ;;  %v303_v54 = vsel %vm111_vm5, %v223_v51, %v142_v53 }
 0x2c6   :  { %305 = vst.msk [vmem:[#allocation8] sm:$0x3] %vm114_vm6, %v303_v54 }
 0x2c7   :  { %406 = shalt.err (!%p403_p12)
}
 0x2c8   :  { %s407_s14 = scalar_lea.hbm %s538_s5, 32 }
 0x2c9   :  { %p408_p13 = scmp.ne.s32.totalorder %s538_s5, %s407_s14  ;;  %p411_p0 = scmp.lt.u32.totalorder %s407_s14, %s538_s5 }
 0x2cb   :  { %p413_p1 = pnand %p411_p0, %p408_p13 }
 0x2cd   :  { %416 = shalt.err (!%p413_p1)
}
 0x2ce   :  { %325 = dma.vmem_to_hbm [thread:$0]  %s323_s1, 32, %s538_s5, [#allocation9]   ;;  %vm301_vm9 = vcmask 254976  }
 0x2cf   :  { %s452_s21 = smov [#allocation7]  }
 0x2d0   :  { %s312_s22 = sshll.u32 %s452_s21, 4  ;;  %s313_s22 = int_to_ptr.vmem [resolvable:$true] %s312_s22 }
 0x2d1   :  { %s417_s23 = scalar_lea.vmem %s313_s22, 32  ;;  %p422_p3 = scmp.lt.s32.totalorder %s313_s22, %s313_s22 }
 0x2d2   :  { %p418_p2 = scmp.ne.s32.totalorder %s313_s22, %s417_s23  ;;  %p423_p4 = scmp.lt.s32.totalorder %s417_s23, %s417_s23 }
 0x2d4   :  { %p424_p5 = por %p423_p4, %p422_p3 }
 0x2d6   :  { %p425_p6 = pnand %p424_p5, %p418_p2 }
 0x394   :  { %v292_v55 = vpop.f32.mrb[0].mxu1 }
 0x395   :  { %v352_v56 = vpop.f32.mrb[1].mxu1  ;;  %v298_v57 = vrot.slane %v292_v55, 7 }
 0x398   :  { %v212_v58 = vpop.f32.mrb[0].mxu0 }
 0x399   :  { %v299_v59 = vsel %vm111_vm5, %v298_v57, %v212_v58  ;;  %v347_v60 = vpop.f32.mrb[1].mxu0 }
 0x39a   :  { %302 = vst.msk [vmem:[#allocation7] sm:$0x3] %vm301_vm9, %v299_v59 }
 0x39b   :  { %428 = shalt.err (!%p425_p6)
}
 0x39c   :  { %s429_s25 = scalar_lea.hbm %s537_s4, 32 }
 0x39d   :  { %p430_p7 = scmp.ne.s32.totalorder %s537_s4, %s429_s25  ;;  %p433_p8 = scmp.lt.u32.totalorder %s429_s25, %s537_s4 }
 0x39f   :  { %p435_p9 = pnand %p433_p8, %p430_p7 }
 0x3a1   :  { %438 = shalt.err (!%p435_p9)
}
 0x3a2   :  { %315 = dma.vmem_to_hbm [thread:$0]  %s313_s22, 32, %s537_s4, [#allocation6]  }
 0x3a3   :  { %441 = dma.done.wait [#allocation6], 32  }
 0x3a4   :  { %442 = vsyncadd [#allocation6], 4294967264 }
 0x3a5   :  { %443 = dma.done.wait [#allocation9], 32  }
 0x3a6   :  { %444 = vsyncadd [#allocation9], 4294967264 }
 0x3a7   :  { %332 = vsyncpa [#allocation5], 1 }
 0x3a8   :  { %333 = vsyncpa [#allocation6], 1 }
 0x3a9   :  { %334 = vsyncpa [#allocation9], 1 }

</bundles_post_ra>
